<compile_context>
chip_gen: v6e
topology: v6e:2x2x1
jax: 0.10.0
libtpu: 0.0.40
codegen_flags: <defaults>
</compile_context>

<pallas_src>
import functools

import jax
import jax.numpy as jnp
from jax.experimental import pallas as pl
from jax.experimental.pallas import tpu as pltpu


# ----------------------------------------------------------------------------
# Hardware / tiling helpers
# ----------------------------------------------------------------------------

def _round_up(a, b):
    return (a + b - 1) // b * b


def _vmem_capacity_bytes():
    """Physical VMEM of the current TPU generation (fallback: v7x's 64 MiB)."""
    try:
        return int(pltpu.get_tpu_info().vmem_capacity_bytes)
    except Exception:
        return 64 << 20


def _vmem_budget_bytes(tm, tn, D, H, w_isz, x_isz, o_isz, nb):
    """Conservative VMEM estimate for one grid step (double-buffered I/O)."""
    del H  # weights are streamed per (tn) block
    weights = 2 * (D * 2 * tn + tn * D) * w_isz          # [Wg|Wu] + Wd blocks (x2 buf)
    biases = 2 * (2 * tn * 4) + 2 * D * 4                # f32 [bg|bu] + bd
    io = 2 * tm * D * (x_isz + o_isz)                    # x / out tiles (x2 buf)
    acc = tm * D * 4 if nb > 1 else 0                    # f32 accumulator scratch
    inter = tm * 2 * tn * 4 + tm * tn * 4 + tm * tn * w_isz  # gu(f32)+h(f32)+h cast
    return weights + biases + io + acc + inter


def _choose_tn(D, H, w_isz, vmem_cap=None):
    """Prefer tn = H (weights fully VMEM-resident); otherwise largest 128-multiple divisor."""
    cap = vmem_cap or _vmem_capacity_bytes()
    usable = int(cap * 0.9)
    tm_probe = 256  # smallest token tile we want to support at this tn

    def fits(t):
        return _vmem_budget_bytes(tm_probe, t, D, H, w_isz, w_isz, w_isz,
                                  H // t) <= usable

    if fits(H):
        return H
    candidates = [t for t in range(128, H, 128) if H % t == 0]
    for t in sorted(candidates, reverse=True):
        if fits(t):
            return t
    return 128 if H % 128 == 0 else H


def _choose_tm(M, D, H, tn, w_isz, x_isz, o_isz, vmem_cap=None):
    """Largest 8-aligned token tile that fits the VMEM budget (linear solve)."""
    cap = vmem_cap or _vmem_capacity_bytes()
    usable = int(cap * 0.9)
    nb = H // tn
    # v5e/v6e (128 MiB VMEM): amortize the weight stream over up to 1024 tokens
    # (past the ~640 FLOP/byte bf16 knee on v6e).  v7x (64 MiB, 2 TCs sharing
    # HBM): 512.
    target = 1024 if cap >= (100 << 20) else 512
    fixed = (2 * (D * 2 * tn + tn * D) * w_isz + 2 * (2 * tn * 4) + 2 * D * 4)
    per_row = (2 * D * (x_isz + o_isz) + (4 * D if nb > 1 else 0)
               + tn * (12 + w_isz))
    tm_cap = max((usable - fixed) // max(per_row, 1), 8)
    tm = min(target, tm_cap, _round_up(M, 8))
    return max((int(tm) // 8) * 8, 8)


# ----------------------------------------------------------------------------
# Kernels
# ----------------------------------------------------------------------------

def _swiglu_kernel_resident(x_ref, wgu_ref, bgu_ref, wd_ref, bd_ref, o_ref, *,
                            tn):
    """nb == 1: full gate/up/down weights stay resident in VMEM; 1-D token grid."""
    x = x_ref[...]                                               # (tm, D)
    gu = jnp.dot(x, wgu_ref[...], preferred_element_type=jnp.float32)
    gu = gu + bgu_ref[...]                                       # (tm, 2*H) f32
    gate = gu[:, :tn]
    up = gu[:, tn:]
    h = gate * jax.nn.sigmoid(gate) * up                         # SiLU(gate) * up, f32
    # TODO(synk): hidden_dropout / out_dropout are identity here (eval / p=0).
    o_ref[...] = (jnp.dot(h.astype(x.dtype), wd_ref[...],
                          preferred_element_type=jnp.float32)
                  + bd_ref[...]).astype(o_ref.dtype)


def _swiglu_kernel_streamed(x_ref, wgu_ref, bgu_ref, wd_ref, bd_ref, o_ref,
                            acc_ref, *, tn):
    """nb > 1: hidden dim streamed in (D,2*tn)/(tn,D) blocks, f32 accumulator."""
    j = pl.program_id(1)

    # Fold bd into the accumulator init -> no per-step (1, D) broadcast.
    @pl.when(j == 0)
    def _():
        acc_ref[...] = jnp.broadcast_to(bd_ref[...], acc_ref.shape)

    x = x_ref[...]                                               # (tm, D)
    gu = jnp.dot(x, wgu_ref[...], preferred_element_type=jnp.float32)
    gu = gu + bgu_ref[...]                                       # (tm, 2*tn) f32
    gate = gu[:, :tn]
    up = gu[:, tn:]
    h = gate * jax.nn.sigmoid(gate) * up
    acc_ref[...] += jnp.dot(h.astype(x.dtype), wd_ref[...],
                            preferred_element_type=jnp.float32)

    @pl.when(j == pl.num_programs(1) - 1)
    def _():
        o_ref[...] = acc_ref[...].astype(o_ref.dtype)


# ----------------------------------------------------------------------------
# Packing (do once at parameter-load time in production) + forward
# ----------------------------------------------------------------------------

def pack_swiglu_params(wg, bg, wu, bu, wd, bd, *, tn=None, param_dtype=None,
                       vmem_cap=None):
    """Repack PyTorch nn.Linear-layout weights for the kernel.

    wg, wu: [H, D]; wd: [D, H]; biases 1-D.  Returns a dict with the fused
    [Wg^T | Wu^T] blocks (interleaved per tn block), Wd^T, f32 biases and the
    tn used.  Call this ONCE at load time; packing is tn-dependent.
    For production pass param_dtype=jnp.bfloat16 (full MXU rate, half the
    weight HBM bytes).
    """
    H, D = wg.shape
    dtype = jnp.dtype(param_dtype) if param_dtype is not None else wg.dtype
    w_isz = jnp.dtype(dtype).itemsize
    if tn is None:
        tn = _choose_tn(D, H, w_isz, vmem_cap)
    assert H % tn == 0, "hidden dim must be divisible by tn"
    nb = H // tn

    wg_t = wg.T.astype(dtype).reshape(D, nb, tn)
    wu_t = wu.T.astype(dtype).reshape(D, nb, tn)
    wgu = jnp.concatenate([wg_t, wu_t], axis=2).reshape(D, 2 * H)
    wd_t = wd.T.astype(dtype)                                    # (H, D)
    bgu = jnp.concatenate(
        [bg.astype(jnp.float32).reshape(nb, tn),
         bu.astype(jnp.float32).reshape(nb, tn)], axis=1).reshape(1, 2 * H)
    bd2 = bd.astype(jnp.float32).reshape(1, D)
    return {"wgu": wgu, "bgu": bgu, "wd_t": wd_t, "bd": bd2, "tn": int(tn)}


def swiglu_mlp_packed(x, params, *, tm=None):
    """Forward pass with pre-packed params.  x: [..., D]."""
    wgu, bgu = params["wgu"], params["bgu"]
    wd_t, bd2 = params["wd_t"], params["bd"]
    tn = params["tn"]

    orig_shape = x.shape
    D = orig_shape[-1]
    H = wd_t.shape[0]
    nb = H // tn
    M = 1
    for s in orig_shape[:-1]:
        M *= s
    x2 = x.reshape(M, D)

    x_isz = x.dtype.itemsize
    o_isz = x.dtype.itemsize
    w_isz = wgu.dtype.itemsize
    cap = _vmem_capacity_bytes()
    if tm is None:
        tm = _choose_tm(M, D, H, tn, w_isz, x_isz, o_isz, cap)
    tm = max((min(int(tm), _round_up(M, 8)) // 8) * 8, 8)

    # Pad tokens so no divisibility constraint leaks to callers.
    M_pad = _round_up(M, tm)
    if M_pad != M:
        x2 = jnp.pad(x2, ((0, M_pad - M), (0, 0)))

    budget = _vmem_budget_bytes(tm, tn, D, H, w_isz, x_isz, o_isz, nb)
    vmem_limit = int(min(max(budget + (4 << 20), 32 << 20), int(cap * 0.9)))

    if nb == 1:
        # Weights resident in VMEM: constant weight block index, no reduction
        # loop, no accumulator scratch.
        grid = (M_pad // tm,)
        in_specs = [
            pl.BlockSpec((tm, D), lambda i: (i, 0)),          # x tile
            pl.BlockSpec((D, 2 * H), lambda i: (0, 0)),       # [Wg^T | Wu^T]
            pl.BlockSpec((1, 2 * H), lambda i: (0, 0)),       # [bg | bu]
            pl.BlockSpec((H, D), lambda i: (0, 0)),           # Wd^T
            pl.BlockSpec((1, D), lambda i: (0, 0)),           # bd
        ]
        out_specs = pl.BlockSpec((tm, D), lambda i: (i, 0))
        scratch = []
        kernel = functools.partial(_swiglu_kernel_resident, tn=tn)
        semantics = ("parallel",)
    else:
        grid = (M_pad // tm, nb)                              # reduction last
        in_specs = [
            pl.BlockSpec((tm, D), lambda i, j: (i, 0)),       # x tile
            pl.BlockSpec((D, 2 * tn), lambda i, j: (0, j)),   # [Wg | Wu] block
            pl.BlockSpec((1, 2 * tn), lambda i, j: (0, j)),   # [bg | bu] block
            pl.BlockSpec((tn, D), lambda i, j: (j, 0)),       # Wd block
            pl.BlockSpec((1, D), lambda i, j: (0, 0)),        # bd
        ]
        out_specs = pl.BlockSpec((tm, D), lambda i, j: (i, 0))
        scratch = [pltpu.VMEM((tm, D), jnp.float32)]
        kernel = functools.partial(_swiglu_kernel_streamed, tn=tn)
        semantics = ("parallel", "arbitrary")

    out = pl.pallas_call(
        kernel,
        out_shape=jax.ShapeDtypeStruct((M_pad, D), x.dtype),
        grid_spec=pltpu.PrefetchScalarGridSpec(
            num_scalar_prefetch=0,
            grid=grid,
            in_specs=in_specs,
            out_specs=out_specs,
            scratch_shapes=scratch,
        ),
        compiler_params=pltpu.CompilerParams(
            dimension_semantics=semantics,
            vmem_limit_bytes=vmem_limit),
    )(x2, wgu, bgu, wd_t, bd2)

    if M_pad != M:
        out = out[:M]
    return out.reshape(orig_shape)


def swiglu_mlp(x, wg, bg, wu, bu, wd, bd, *, tm=None, tn=None,
               param_dtype=None):
    """Convenience wrapper (packs per call).  Production: pack once via
    pack_swiglu_params() and call swiglu_mlp_packed()."""
    params = pack_swiglu_params(wg, bg, wu, bu, wd, bd, tn=tn,
                                param_dtype=param_dtype)
    return swiglu_mlp_packed(x, params, tm=tm)


def swiglu_mlp_ref(x, wg, bg, wu, bu, wd, bd):
    gate = jnp.einsum("btd,hd->bth", x, wg) + bg
    up = jnp.einsum("btd,hd->bth", x, wu) + bu
    h = gate * jax.nn.sigmoid(gate) * up
    return jnp.einsum("bth,dh->btd", h, wd) + bd


if __name__ == "__main__":
    B, T, D = 2, 16, 128          # model_dim = 128, hidden = 4*128 = 512
    H = 4 * D

    key = jax.random.PRNGKey(0)
    kx, kwg, kbg, kwu, kbu, kwd, kbd = jax.random.split(key, 7)

    x = jax.random.normal(kx, (B, T, D), dtype=jnp.float32)
    # PyTorch nn.Linear weight layout: [out_features, in_features]
    wg = jax.random.normal(kwg, (H, D), dtype=jnp.float32) * (1.0 / D ** 0.5)
    bg = jax.random.normal(kbg, (H,), dtype=jnp.float32) * 0.01
    wu = jax.random.normal(kwu, (H, D), dtype=jnp.float32) * (1.0 / D ** 0.5)
    bu = jax.random.normal(kbu, (H,), dtype=jnp.float32) * 0.01
    wd = jax.random.normal(kwd, (D, H), dtype=jnp.float32) * (1.0 / H ** 0.5)
    bd = jax.random.normal(kbd, (D,), dtype=jnp.float32) * 0.01

    ref = swiglu_mlp_ref(x, wg, bg, wu, bu, wd, bd)

    # 1) Production-style path: pack once (tn auto -> H here, weights resident),
    #    tm auto-selected against the real VMEM capacity.
    params = pack_swiglu_params(wg, bg, wu, bu, wd, bd)
    out1 = jax.block_until_ready(swiglu_mlp_packed(x, params))
    assert out1.shape == (B, T, D)
    assert jnp.allclose(out1, ref, atol=2e-3, rtol=2e-3), "resident path mismatch"

    # 2) Streamed/accumulator path (nb > 1) plus the token-padding path
    #    (tm=24 does not divide M=32), to exercise the reduction grid.
    params_s = pack_swiglu_params(wg, bg, wu, bu, wd, bd, tn=128)
    out2 = jax.block_until_ready(swiglu_mlp_packed(x, params_s, tm=24))
    assert out2.shape == (B, T, D)
    assert jnp.allclose(out2, ref, atol=2e-3, rtol=2e-3), "streamed path mismatch"

    print("KERNEL_OK")
</pallas_src>

<mosaic_0001>
module attributes {stable_mosaic.version = 11 : i64} {
  func.func @_swiglu_kernel_resident(%arg0: i32, %arg1: memref<32x128xf32, #tpu.memory_space<vmem>>, %arg2: memref<128x1024xf32, #tpu.memory_space<vmem>>, %arg3: memref<1x1024xf32, #tpu.memory_space<vmem>>, %arg4: memref<512x128xf32, #tpu.memory_space<vmem>>, %arg5: memref<1x128xf32, #tpu.memory_space<vmem>>, %arg6: memref<32x128xf32, #tpu.memory_space<vmem>>) attributes {dimension_semantics = [#tpu.dimension_semantics<parallel>], iteration_bounds = array<i64: 1>, scalar_prefetch = 0 : i64, scratch_operands = 0 : i64, tpu.core_type = #tpu.core_type<tc>, window_params = [{transform_indices = @transform_0, window_bounds = array<i64: 32, 128>}, {pipeline_mode = #tpu.pipeline_mode<synchronous>, transform_indices = @transform_1, window_bounds = array<i64: 128, 1024>}, {pipeline_mode = #tpu.pipeline_mode<synchronous>, transform_indices = @transform_2, window_bounds = array<i64: 1, 1024>}, {pipeline_mode = #tpu.pipeline_mode<synchronous>, transform_indices = @transform_3, window_bounds = array<i64: 512, 128>}, {pipeline_mode = #tpu.pipeline_mode<synchronous>, transform_indices = @transform_4, window_bounds = array<i64: 1, 128>}, {transform_indices = @transform_5, window_bounds = array<i64: 32, 128>}]} {
    %c0 = arith.constant 0 : index
    %c0_0 = arith.constant 0 : index
    %0 = vector.load %arg1[%c0, %c0_0] : memref<32x128xf32, #tpu.memory_space<vmem>>, vector<32x128xf32>
    %c0_1 = arith.constant 0 : index
    %c0_2 = arith.constant 0 : index
    %1 = vector.load %arg2[%c0_1, %c0_2] : memref<128x1024xf32, #tpu.memory_space<vmem>>, vector<128x1024xf32>
    %cst = arith.constant dense<0.000000e+00> : vector<32x1024xf32>
    %2 = tpu.matmul %0, %1, %cst {dimension_numbers = #tpu.dot_dimension_numbers<[1], [0], [0], [1], [0, 0, 1, 1], [], []>} : vector<32x128xf32>, vector<128x1024xf32>, vector<32x1024xf32> -> vector<32x1024xf32>
    %c0_3 = arith.constant 0 : index
    %c0_4 = arith.constant 0 : index
    %3 = vector.load %arg3[%c0_3, %c0_4] : memref<1x1024xf32, #tpu.memory_space<vmem>>, vector<1x1024xf32>
    %4 = vector.broadcast %3 : vector<1x1024xf32> to vector<32x1024xf32>
    %5 = arith.addf %2, %4 : vector<32x1024xf32>
    %6 = vector.extract_strided_slice %5 {offsets = [0, 0], sizes = [32, 512], strides = [1, 1]} : vector<32x1024xf32> to vector<32x512xf32>
    %7 = vector.extract_strided_slice %5 {offsets = [0, 512], sizes = [32, 512], strides = [1, 1]} : vector<32x1024xf32> to vector<32x512xf32>
    %8 = arith.negf %6 : vector<32x512xf32>
    %9 = math.exp %8 : vector<32x512xf32>
    %cst_5 = arith.constant 1.000000e+00 : f32
    %10 = vector.broadcast %cst_5 : f32 to vector<32x512xf32>
    %11 = arith.addf %10, %9 : vector<32x512xf32>
    %12 = arith.divf %10, %11 : vector<32x512xf32>
    %13 = arith.mulf %6, %12 : vector<32x512xf32>
    %14 = arith.mulf %13, %7 : vector<32x512xf32>
    %c0_6 = arith.constant 0 : index
    %c0_7 = arith.constant 0 : index
    %15 = vector.load %arg4[%c0_6, %c0_7] : memref<512x128xf32, #tpu.memory_space<vmem>>, vector<512x128xf32>
    %cst_8 = arith.constant dense<0.000000e+00> : vector<32x128xf32>
    %16 = tpu.matmul %14, %15, %cst_8 {dimension_numbers = #tpu.dot_dimension_numbers<[1], [0], [0], [1], [0, 0, 1, 1], [], []>} : vector<32x512xf32>, vector<512x128xf32>, vector<32x128xf32> -> vector<32x128xf32>
    %c0_9 = arith.constant 0 : index
    %c0_10 = arith.constant 0 : index
    %17 = vector.load %arg5[%c0_9, %c0_10] : memref<1x128xf32, #tpu.memory_space<vmem>>, vector<1x128xf32>
    %18 = vector.broadcast %17 : vector<1x128xf32> to vector<32x128xf32>
    %19 = arith.addf %16, %18 : vector<32x128xf32>
    %c0_11 = arith.constant 0 : index
    %c0_12 = arith.constant 0 : index
    %20 = vector.load %arg6[%c0_11, %c0_12] : memref<32x128xf32, #tpu.memory_space<vmem>>, vector<32x128xf32>
    tpu.vector_store %arg6[%c0_11, %c0_12], %19 {strides = array<i32>} : memref<32x128xf32, #tpu.memory_space<vmem>>, vector<32x128xf32>,
    return
  }
  func.func @transform_0(%arg0: i32) -> (i32, i32) {
    %c0_i32 = arith.constant 0 : i32
    %c0_i32_0 = arith.constant 0 : i32
    return %arg0, %c0_i32 : i32, i32
  }
  func.func @transform_1(%arg0: i32) -> (i32, i32) {
    %c0_i32 = arith.constant 0 : i32
    %c0_i32_0 = arith.constant 0 : i32
    %c0_i32_1 = arith.constant 0 : i32
    return %c0_i32, %c0_i32_0 : i32, i32
  }
  func.func @transform_2(%arg0: i32) -> (i32, i32) {
    %c0_i32 = arith.constant 0 : i32
    %c0_i32_0 = arith.constant 0 : i32
    %c0_i32_1 = arith.constant 0 : i32
    return %c0_i32, %c0_i32_0 : i32, i32
  }
  func.func @transform_3(%arg0: i32) -> (i32, i32) {
    %c0_i32 = arith.constant 0 : i32
    %c0_i32_0 = arith.constant 0 : i32
    %c0_i32_1 = arith.constant 0 : i32
    return %c0_i32, %c0_i32_0 : i32, i32
  }
  func.func @transform_4(%arg0: i32) -> (i32, i32) {
    %c0_i32 = arith.constant 0 : i32
    %c0_i32_0 = arith.constant 0 : i32
    %c0_i32_1 = arith.constant 0 : i32
    return %c0_i32, %c0_i32_0 : i32, i32
  }
  func.func @transform_5(%arg0: i32) -> (i32, i32) {
    %c0_i32 = arith.constant 0 : i32
    %c0_i32_0 = arith.constant 0 : i32
    return %arg0, %c0_i32 : i32, i32
  }
}

</mosaic_0001>

<bundles_post_ra>
// kernel: tpu_custom_call.1
= control target key start
LH: loop header
LB: loop body
LE: loop exit
PB: predicated region body
PF: predicated region fallthrough
CT: control target
= control target key end

     0   :  { %10 = vsyncpa [#allocation3], 0  ;;  %s1516_s0 = inlined_call_operand.hbm [shape: f32[32,128], index: 0, kind: input, shape index: {}]   ;;  %s1517_s1 = inlined_call_operand.hbm [shape: f32[128,1024], index: 1, kind: input, shape index: {}]   ;;  %s1518_s2 = inlined_call_operand.hbm [shape: f32[1,1024], index: 2, kind: input, shape index: {}]   ;;  %s1519_s3 = inlined_call_operand.hbm [shape: f32[512,128], index: 3, kind: input, shape index: {}]   ;;  %s1520_s4 = inlined_call_operand.vmem [shape: f32[1,128], index: 4, kind: input, shape index: {}]   ;;  %s1521_s5 = inlined_call_operand.hbm [shape: f32[32,128], index: 5, kind: output, shape index: {}]  }
   0x1   :  { %11 = vsyncpa [#allocation6], 0 }
   0x2   :  { %12 = vsyncpa [#allocation9], 0 }
   0x3   :  { %13 = vsyncpa [#allocation4], 0  ;;  %s1283_s18 = smov [#allocation5]  }
   0x4   :  { %s31_s19 = sshll.u32 %s1283_s18, 4  ;;  %s32_s19 = int_to_ptr.vmem [resolvable:$true] %s31_s19 }
   0x5   :  { %s1183_s20 = scalar_lea.vmem %s32_s19, 16384  ;;  %p1188_p1 = scmp.lt.s32.totalorder %s32_s19, %s32_s19 }
   0x6   :  { %p1184_p0 = scmp.ne.s32.totalorder %s32_s19, %s1183_s20  ;;  %p1189_p2 = scmp.lt.s32.totalorder %s1183_s20, %s1183_s20 }
   0x8   :  { %p1190_p3 = por %p1189_p2, %p1188_p1 }
   0xa   :  { %p1191_p4 = pnand %p1190_p3, %p1184_p0 }
   0xc   :  { %1194 = shalt.err (!%p1191_p4)
}
   0xd   :  { %s1284_s21 = smov 1024   ;;  %s1285_s22 = smov 64  }
   0xe   :  { %37 = dma.hbm_to_vmem [thread:$0]  %s1517_s1, 16384, %s32_s19, [#allocation6], %s1284_s21, %s1284_s21, %s1285_s22  }
   0xf   :  { %s1286_s25 = smov [#allocation2]  }
  0x10   :  { %s19_s26 = sshll.u32 %s1286_s25, 4  ;;  %s20_s26 = int_to_ptr.vmem [resolvable:$true] %s19_s26 }
  0x11   :  { %s1203_s27 = scalar_lea.vmem %s20_s26, 512  ;;  %p1208_p6 = scmp.lt.s32.totalorder %s20_s26, %s20_s26 }
  0x12   :  { %p1204_p5 = scmp.ne.s32.totalorder %s20_s26, %s1203_s27  ;;  %p1209_p7 = scmp.lt.s32.totalorder %s1203_s27, %s1203_s27 }
  0x14   :  { %p1210_p8 = por %p1209_p7, %p1208_p6 }
  0x16   :  { %p1211_p9 = pnand %p1210_p8, %p1204_p5 }
  0x18   :  { %1214 = shalt.err (!%p1211_p9)
}
  0x19   :  { %s1287_s28 = smov 128   ;;  %s1288_s29 = smov 8  }
  0x1a   :  { %25 = dma.hbm_to_vmem [thread:$0]  %s1516_s0, 512, %s20_s26, [#allocation3], %s1287_s28, %s1287_s28, %s1288_s29  }
  0x1b   :  { %s1289_s1 = smov [#allocation7]   ;;  %s1290_s8 = smov [#allocation8]  }
  0x1c   :  { %s44_s7 = sshll.u32 %s1289_s1, 4  ;;  %s53_s9 = sshll.u32 %s1290_s8, 4  ;;  %s45_s7 = int_to_ptr.vmem [resolvable:$true] %s44_s7  ;;  %s54_s9 = int_to_ptr.vmem [resolvable:$true] %s53_s9 }
  0x1d   :  { %s1223_s10 = scalar_lea.vmem %s45_s7, 128  ;;  %p1228_p11 = scmp.lt.s32.totalorder %s45_s7, %s45_s7 }
  0x1e   :  { %p1224_p10 = scmp.ne.s32.totalorder %s45_s7, %s1223_s10  ;;  %p1229_p12 = scmp.lt.s32.totalorder %s1223_s10, %s1223_s10 }
  0x20   :  { %p1230_p13 = por %p1229_p12, %p1228_p11 }
  0x22   :  { %p1231_p0 = pnand %p1230_p13, %p1224_p10 }
  0x24   :  { %1234 = shalt.err (!%p1231_p0)
}
  0x25   :  { %47 = dma.hbm_to_vmem [thread:$0]  %s1518_s2, 128, %s45_s7, [#allocation6]  }
  0x26   :  { %s1243_s13 = scalar_lea.vmem %s54_s9, 8192  ;;  %p1248_p2 = scmp.lt.s32.totalorder %s54_s9, %s54_s9 }
  0x27   :  { %p1244_p1 = scmp.ne.s32.totalorder %s54_s9, %s1243_s13  ;;  %p1249_p3 = scmp.lt.s32.totalorder %s1243_s13, %s1243_s13 }
  0x29   :  { %p1250_p4 = por %p1249_p3, %p1248_p2 }
  0x2b   :  { %p1251_p5 = pnand %p1250_p4, %p1244_p1 }
  0x2d   :  { %1254 = shalt.err (!%p1251_p5)
}
  0x2e   :  { %59 = dma.hbm_to_vmem [thread:$0]  %s1519_s3, 8192, %s54_s9, [#allocation9], %s1287_s28, %s1287_s28, %s1288_s29  }
  0x2f   :  { %1275 = dma.done.wait [#allocation3], 512  }
  0x30   :  { %1276 = vsyncadd [#allocation3], 4294966784 }
  0x31   :  { %1277 = dma.done.wait [#allocation6], 16512  }
  0x32   :  { %1278 = vsyncadd [#allocation6], 4294950784 }
  0x33   :  { %1279 = dma.done.wait [#allocation9], 8192  }
  0x34   :  { %1280 = vsyncadd [#allocation9], 4294959104  ;;  %v1291_v0 = vmov 0.0   ;;  %v199_v1 = vld [vmem:[#allocation5 + $0x3c8] sm:$0xff]  ;;  %v201_v2 = vld [vmem:[#allocation5 + $0x3d8] sm:$0xff] }
  0x35   :  { %312 = vmatprep.mubr.f32.mxu0 %v1291_v0  ;;  %401 = vmatprep.mubr.f32.mxu1 %v1291_v0  ;;  %v198_v3 = vld [vmem:[#allocation5 + $0x3c0] sm:$0xff]  ;;  %v200_v4 = vld [vmem:[#allocation5 + $0x3d0] sm:$0xff]  ;;  %v191_v5 = vld [vmem:[#allocation5 + $0x388] sm:$0xff] }
  0x36   :  { %248 = vmatprep.subr.mxu0 %v199_v1  ;;  %337 = vmatprep.subr.mxu1 %v201_v2  ;;  %v193_v6 = vld [vmem:[#allocation5 + $0x398] sm:$0xff]  ;;  %v190_v7 = vld [vmem:[#allocation5 + $0x380] sm:$0xff]  ;;  %v192_v8 = vld [vmem:[#allocation5 + $0x390] sm:$0xff] }
  0x37   :  { %249 = vmatpush1.msra.mxu0 %v198_v3  ;;  %338 = vmatpush1.msra.mxu1 %v200_v4  ;;  %v183_v9 = vld [vmem:[#allocation5 + $0x348] sm:$0xff]  ;;  %v185_v10 = vld [vmem:[#allocation5 + $0x358] sm:$0xff]  ;;  %v182_v11 = vld [vmem:[#allocation5 + $0x340] sm:$0xff] }
  0x38   :  { %250 = vmatprep.subr.mxu0 %v191_v5  ;;  %339 = vmatprep.subr.mxu1 %v193_v6  ;;  %v184_v12 = vld [vmem:[#allocation5 + $0x350] sm:$0xff]  ;;  %v175_v13 = vld [vmem:[#allocation5 + $0x308] sm:$0xff]  ;;  %v177_v14 = vld [vmem:[#allocation5 + $0x318] sm:$0xff] }
  0x39   :  { %251 = vmatpush1.msra.mxu0 %v190_v7  ;;  %340 = vmatpush1.msra.mxu1 %v192_v8  ;;  %v174_v15 = vld [vmem:[#allocation5 + $0x300] sm:$0xff]  ;;  %v176_v16 = vld [vmem:[#allocation5 + $0x310] sm:$0xff]  ;;  %v167_v17 = vld [vmem:[#allocation5 + $0x2c8] sm:$0xff] }
  0x3a   :  { %252 = vmatprep.subr.mxu0 %v183_v9  ;;  %341 = vmatprep.subr.mxu1 %v185_v10  ;;  %v169_v18 = vld [vmem:[#allocation5 + $0x2d8] sm:$0xff]  ;;  %v166_v19 = vld [vmem:[#allocation5 + $0x2c0] sm:$0xff]  ;;  %v168_v20 = vld [vmem:[#allocation5 + $0x2d0] sm:$0xff] }
  0x3b   :  { %253 = vmatpush1.msra.mxu0 %v182_v11  ;;  %342 = vmatpush1.msra.mxu1 %v184_v12  ;;  %v159_v21 = vld [vmem:[#allocation5 + $0x288] sm:$0xff]  ;;  %v161_v22 = vld [vmem:[#allocation5 + $0x298] sm:$0xff]  ;;  %v158_v23 = vld [vmem:[#allocation5 + $0x280] sm:$0xff] }
  0x3c   :  { %254 = vmatprep.subr.mxu0 %v175_v13  ;;  %343 = vmatprep.subr.mxu1 %v177_v14  ;;  %v160_v24 = vld [vmem:[#allocation5 + $0x290] sm:$0xff]  ;;  %v151_v25 = vld [vmem:[#allocation5 + $0x248] sm:$0xff]  ;;  %v153_v26 = vld [vmem:[#allocation5 + $0x258] sm:$0xff] }
  0x3d   :  { %255 = vmatpush1.msra.mxu0 %v174_v15  ;;  %344 = vmatpush1.msra.mxu1 %v176_v16  ;;  %v150_v27 = vld [vmem:[#allocation5 + $0x240] sm:$0xff]  ;;  %v152_v28 = vld [vmem:[#allocation5 + $0x250] sm:$0xff]  ;;  %v143_v29 = vld [vmem:[#allocation5 + $0x208] sm:$0xff] }
  0x3e   :  { %256 = vmatprep.subr.mxu0 %v167_v17  ;;  %345 = vmatprep.subr.mxu1 %v169_v18  ;;  %v145_v30 = vld [vmem:[#allocation5 + $0x218] sm:$0xff]  ;;  %v142_v31 = vld [vmem:[#allocation5 + $0x200] sm:$0xff]  ;;  %v144_v32 = vld [vmem:[#allocation5 + $0x210] sm:$0xff] }
  0x3f   :  { %257 = vmatpush1.msra.mxu0 %v166_v19  ;;  %346 = vmatpush1.msra.mxu1 %v168_v20  ;;  %v135_v33 = vld [vmem:[#allocation5 + $0x1c8] sm:$0xff]  ;;  %v137_v34 = vld [vmem:[#allocation5 + $0x1d8] sm:$0xff]  ;;  %v134_v35 = vld [vmem:[#allocation5 + $0x1c0] sm:$0xff] }
  0x40   :  { %258 = vmatprep.subr.mxu0 %v159_v21  ;;  %347 = vmatprep.subr.mxu1 %v161_v22  ;;  %v136_v36 = vld [vmem:[#allocation5 + $0x1d0] sm:$0xff]  ;;  %v127_v37 = vld [vmem:[#allocation5 + $0x188] sm:$0xff]  ;;  %v129_v38 = vld [vmem:[#allocation5 + $0x198] sm:$0xff] }
  0x41   :  { %259 = vmatpush1.msra.mxu0 %v158_v23  ;;  %348 = vmatpush1.msra.mxu1 %v160_v24  ;;  %v126_v39 = vld [vmem:[#allocation5 + $0x180] sm:$0xff]  ;;  %v128_v40 = vld [vmem:[#allocation5 + $0x190] sm:$0xff]  ;;  %v119_v41 = vld [vmem:[#allocation5 + $0x148] sm:$0xff] }
  0x42   :  { %260 = vmatprep.subr.mxu0 %v151_v25  ;;  %349 = vmatprep.subr.mxu1 %v153_v26  ;;  %v121_v42 = vld [vmem:[#allocation5 + $0x158] sm:$0xff]  ;;  %v118_v43 = vld [vmem:[#allocation5 + $0x140] sm:$0xff]  ;;  %v120_v44 = vld [vmem:[#allocation5 + $0x150] sm:$0xff] }
  0x43   :  { %261 = vmatpush1.msra.mxu0 %v150_v27  ;;  %350 = vmatpush1.msra.mxu1 %v152_v28  ;;  %v111_v45 = vld [vmem:[#allocation5 + $0x108] sm:$0xff]  ;;  %v113_v46 = vld [vmem:[#allocation5 + $0x118] sm:$0xff]  ;;  %v110_v47 = vld [vmem:[#allocation5 + $0x100] sm:$0xff] }
  0x44   :  { %262 = vmatprep.subr.mxu0 %v143_v29  ;;  %351 = vmatprep.subr.mxu1 %v145_v30  ;;  %v112_v48 = vld [vmem:[#allocation5 + $0x110] sm:$0xff]  ;;  %v103_v49 = vld [vmem:[#allocation5 + $0xc8] sm:$0xff]  ;;  %v105_v50 = vld [vmem:[#allocation5 + $0xd8] sm:$0xff] }
  0x45   :  { %263 = vmatpush1.msra.mxu0 %v142_v31  ;;  %352 = vmatpush1.msra.mxu1 %v144_v32  ;;  %v102_v51 = vld [vmem:[#allocation5 + $0xc0] sm:$0xff]  ;;  %v104_v52 = vld [vmem:[#allocation5 + $0xd0] sm:$0xff]  ;;  %v95_v53 = vld [vmem:[#allocation5 + $0x88] sm:$0xff] }
  0x46   :  { %264 = vmatprep.subr.mxu0 %v135_v33  ;;  %353 = vmatprep.subr.mxu1 %v137_v34  ;;  %v97_v54 = vld [vmem:[#allocation5 + $0x98] sm:$0xff]  ;;  %v94_v55 = vld [vmem:[#allocation5 + $0x80] sm:$0xff]  ;;  %v96_v56 = vld [vmem:[#allocation5 + $0x90] sm:$0xff] }
  0x47   :  { %265 = vmatpush1.msra.mxu0 %v134_v35  ;;  %354 = vmatpush1.msra.mxu1 %v136_v36  ;;  %v87_v57 = vld [vmem:[#allocation5 + $0x48] sm:$0xff]  ;;  %v89_v58 = vld [vmem:[#allocation5 + $0x58] sm:$0xff]  ;;  %v86_v59 = vld [vmem:[#allocation5 + $0x40] sm:$0xff] }
  0x48   :  { %266 = vmatprep.subr.mxu0 %v127_v37  ;;  %355 = vmatprep.subr.mxu1 %v129_v38  ;;  %v88_v60 = vld [vmem:[#allocation5 + $0x50] sm:$0xff]  ;;  %v79_v61 = vld [vmem:[#allocation5 + $0x8] sm:$0xff]  ;;  %v81_v62 = vld [vmem:[#allocation5 + $0x18] sm:$0xff] }
  0x49   :  { %267 = vmatpush1.msra.mxu0 %v126_v39  ;;  %356 = vmatpush1.msra.mxu1 %v128_v40  ;;  %v78_v63 = vld [vmem:[#allocation5] sm:$0xff]  ;;  %v80_v1 = vld [vmem:[#allocation5 + $0x10] sm:$0xff]  ;;  %v203_v3 = vld [vmem:[#allocation5 + $0x3e8] sm:$0xff] }
  0x4a   :  { %268 = vmatprep.subr.mxu0 %v119_v41  ;;  %357 = vmatprep.subr.mxu1 %v121_v42  ;;  %v1343_v2 = vld [vmem:[#allocation2] sm:$0xff]  ;;  %v205_v4 = vld [vmem:[#allocation5 + $0x3f8] sm:$0xff]  ;;  %v195_v6 = vld [vmem:[#allocation5 + $0x3a8] sm:$0xff] }
  0x4b   :  { %269 = vmatpush1.msra.mxu0 %v118_v43  ;;  %358 = vmatpush1.msra.mxu1 %v120_v44  ;;  %v202_v5 = vld [vmem:[#allocation5 + $0x3e0] sm:$0xff]  ;;  %v204_v8 = vld [vmem:[#allocation5 + $0x3f0] sm:$0xff]  ;;  %v1348_v9 = vld [vmem:[#allocation2 + $0x8] sm:$0xff] }
  0x4c   :  { %270 = vmatprep.subr.mxu0 %v111_v45  ;;  %359 = vmatprep.subr.mxu1 %v113_v46  ;;  %v194_v7 = vld [vmem:[#allocation5 + $0x3a0] sm:$0xff]  ;;  %v187_v10 = vld [vmem:[#allocation5 + $0x368] sm:$0xff]  ;;  %v197_v11 = vld [vmem:[#allocation5 + $0x3b8] sm:$0xff] }
  0x4d   :  { %271 = vmatpush1.msra.mxu0 %v110_v47  ;;  %360 = vmatpush1.msra.mxu1 %v112_v48  ;;  %v186_v12 = vld [vmem:[#allocation5 + $0x360] sm:$0xff]  ;;  %v196_v13 = vld [vmem:[#allocation5 + $0x3b0] sm:$0xff]  ;;  %v179_v14 = vld [vmem:[#allocation5 + $0x328] sm:$0xff] }
  0x4e   :  { %272 = vmatprep.subr.mxu0 %v103_v49  ;;  %361 = vmatprep.subr.mxu1 %v105_v50  ;;  %v189_v15 = vld [vmem:[#allocation5 + $0x378] sm:$0xff]  ;;  %v178_v16 = vld [vmem:[#allocation5 + $0x320] sm:$0xff]  ;;  %v188_v17 = vld [vmem:[#allocation5 + $0x370] sm:$0xff] }
  0x4f   :  { %273 = vmatpush1.msra.mxu0 %v102_v51  ;;  %362 = vmatpush1.msra.mxu1 %v104_v52  ;;  %v1353_v18 = vld [vmem:[#allocation2 + $0x10] sm:$0xff]  ;;  %v171_v19 = vld [vmem:[#allocation5 + $0x2e8] sm:$0xff]  ;;  %v181_v20 = vld [vmem:[#allocation5 + $0x338] sm:$0xff] }
  0x50   :  { %274 = vmatprep.subr.mxu0 %v95_v53  ;;  %363 = vmatprep.subr.mxu1 %v97_v54  ;;  %v170_v21 = vld [vmem:[#allocation5 + $0x2e0] sm:$0xff]  ;;  %v180_v22 = vld [vmem:[#allocation5 + $0x330] sm:$0xff]  ;;  %v163_v23 = vld [vmem:[#allocation5 + $0x2a8] sm:$0xff] }
  0x51   :  { %275 = vmatpush1.msra.mxu0 %v94_v55  ;;  %364 = vmatpush1.msra.mxu1 %v96_v56  ;;  %v173_v24 = vld [vmem:[#allocation5 + $0x2f8] sm:$0xff]  ;;  %v162_v25 = vld [vmem:[#allocation5 + $0x2a0] sm:$0xff]  ;;  %v172_v26 = vld [vmem:[#allocation5 + $0x2f0] sm:$0xff] }
  0x52   :  { %276 = vmatprep.subr.mxu0 %v87_v57  ;;  %365 = vmatprep.subr.mxu1 %v89_v58  ;;  %v1359_v27 = vld [vmem:[#allocation2 + $0x18] sm:$0xff]  ;;  %v155_v28 = vld [vmem:[#allocation5 + $0x268] sm:$0xff]  ;;  %v154_v30 = vld [vmem:[#allocation5 + $0x260] sm:$0xff] }
  0x53   :  { %277 = vmatpush1.msra.mxu0 %v86_v59  ;;  %366 = vmatpush1.msra.mxu1 %v88_v60  ;;  %v165_v29 = vld [vmem:[#allocation5 + $0x2b8] sm:$0xff]  ;;  %v164_v31 = vld [vmem:[#allocation5 + $0x2b0] sm:$0xff]  ;;  %v147_v32 = vld [vmem:[#allocation5 + $0x228] sm:$0xff] }
  0x54   :  { %278 = vmatprep.subr.mxu0 %v79_v61  ;;  %367 = vmatprep.subr.mxu1 %v81_v62  ;;  %v157_v33 = vld [vmem:[#allocation5 + $0x278] sm:$0xff]  ;;  %v146_v34 = vld [vmem:[#allocation5 + $0x220] sm:$0xff]  ;;  %v156_v35 = vld [vmem:[#allocation5 + $0x270] sm:$0xff] }
  0x55   :  { %279 = vmatpush1.msra.mxu0 %v78_v63  ;;  %368 = vmatpush1.msra.mxu1 %v80_v1  ;;  %v139_v36 = vld [vmem:[#allocation5 + $0x1e8] sm:$0xff]  ;;  %v149_v37 = vld [vmem:[#allocation5 + $0x238] sm:$0xff]  ;;  %v138_v38 = vld [vmem:[#allocation5 + $0x1e0] sm:$0xff] }
  0x56   :  { %313 = vmatmul.mubr.f32.vlgmr.msra.gmra.mxu0 %v1343_v2  ;;  %402 = vmatmul.mubr.f32.vlgmr.msra.gmra.mxu1 %v1343_v2  ;;  %v148_v39 = vld [vmem:[#allocation5 + $0x230] sm:$0xff]  ;;  %v131_v40 = vld [vmem:[#allocation5 + $0x1a8] sm:$0xff]  ;;  %v141_v41 = vld [vmem:[#allocation5 + $0x1f8] sm:$0xff] }
  0x57   :  { %426 = vmatprep.subr.mxu0 %v203_v3  ;;  %515 = vmatprep.subr.mxu1 %v205_v4  ;;  %v130_v42 = vld [vmem:[#allocation5 + $0x1a0] sm:$0xff]  ;;  %v140_v43 = vld [vmem:[#allocation5 + $0x1f0] sm:$0xff]  ;;  %v123_v44 = vld [vmem:[#allocation5 + $0x168] sm:$0xff] }
  0x58   :  { %427 = vmatpush1.msra.mxu0 %v202_v5  ;;  %318 = vmatprep.mubr.f32.mxu0 %v1291_v0  ;;  %v133_v45 = vld [vmem:[#allocation5 + $0x1b8] sm:$0xff]  ;;  %v122_v46 = vld [vmem:[#allocation5 + $0x160] sm:$0xff]  ;;  %v132_v47 = vld [vmem:[#allocation5 + $0x1b0] sm:$0xff] }
  0x59   :  { %428 = vmatprep.subr.mxu0 %v195_v6  ;;  %407 = vmatprep.mubr.f32.mxu1 %v1291_v0  ;;  %v115_v48 = vld [vmem:[#allocation5 + $0x128] sm:$0xff]  ;;  %v125_v49 = vld [vmem:[#allocation5 + $0x178] sm:$0xff]  ;;  %v114_v50 = vld [vmem:[#allocation5 + $0x120] sm:$0xff] }
  0x5a   :  { %429 = vmatpush1.msra.mxu0 %v194_v7  ;;  %516 = vmatpush1.msra.mxu1 %v204_v8  ;;  %v124_v51 = vld [vmem:[#allocation5 + $0x170] sm:$0xff]  ;;  %v107_v52 = vld [vmem:[#allocation5 + $0xe8] sm:$0xff]  ;;  %v117_v53 = vld [vmem:[#allocation5 + $0x138] sm:$0xff] }
  0x5b   :  { %319 = vmatmul.mubr.f32.gmra.mxu0 %v1348_v9  ;;  %408 = vmatmul.mubr.f32.gmra.mxu1 %v1348_v9  ;;  %v106_v54 = vld [vmem:[#allocation5 + $0xe0] sm:$0xff]  ;;  %v116_v55 = vld [vmem:[#allocation5 + $0x130] sm:$0xff]  ;;  %v99_v56 = vld [vmem:[#allocation5 + $0xa8] sm:$0xff] }
  0x5c   :  { %430 = vmatprep.subr.mxu0 %v187_v10  ;;  %517 = vmatprep.subr.mxu1 %v197_v11  ;;  %v109_v57 = vld [vmem:[#allocation5 + $0xf8] sm:$0xff]  ;;  %v98_v58 = vld [vmem:[#allocation5 + $0xa0] sm:$0xff]  ;;  %v108_v59 = vld [vmem:[#allocation5 + $0xf0] sm:$0xff] }
  0x5d   :  { %431 = vmatpush1.msra.mxu0 %v186_v12  ;;  %518 = vmatpush1.msra.mxu1 %v196_v13  ;;  %v91_v60 = vld [vmem:[#allocation5 + $0x68] sm:$0xff]  ;;  %v101_v61 = vld [vmem:[#allocation5 + $0xb8] sm:$0xff]  ;;  %v90_v62 = vld [vmem:[#allocation5 + $0x60] sm:$0xff] }
  0x5e   :  { %432 = vmatprep.subr.mxu0 %v179_v14  ;;  %519 = vmatprep.subr.mxu1 %v189_v15  ;;  %v100_v63 = vld [vmem:[#allocation5 + $0xb0] sm:$0xff]  ;;  %v83_v1 = vld [vmem:[#allocation5 + $0x28] sm:$0xff]  ;;  %v93_v3 = vld [vmem:[#allocation5 + $0x78] sm:$0xff] }
  0x5f   :  { %324 = vmatprep.mubr.f32.mxu0 %v1291_v0  ;;  %413 = vmatprep.mubr.f32.mxu1 %v1291_v0  ;;  %v82_v4 = vld [vmem:[#allocation5 + $0x20] sm:$0xff]  ;;  %v92_v5 = vld [vmem:[#allocation5 + $0x70] sm:$0xff]  ;;  %v85_v6 = vld [vmem:[#allocation5 + $0x38] sm:$0xff] }
  0x60   :  { %433 = vmatpush1.msra.mxu0 %v178_v16  ;;  %520 = vmatpush1.msra.mxu1 %v188_v17  ;;  %v84_v7 = vld [vmem:[#allocation5 + $0x30] sm:$0xff]  ;;  %v795_v8 = vld [vmem:[#allocation8 + $0x1f8] sm:$0xff]  ;;  %v762_v11 = vld [vmem:[#allocation8 + $0xf0] sm:$0xff] }
  0x61   :  { %325 = vmatmul.mubr.f32.gmra.mxu0 %v1353_v18  ;;  %414 = vmatmul.mubr.f32.gmra.mxu1 %v1353_v18  ;;  %v747_v10 = vld [vmem:[#allocation8 + $0x78] sm:$0xff]  ;;  %v794_v12 = vld [vmem:[#allocation8 + $0x1f0] sm:$0xff]  ;;  %v761_v15 = vld [vmem:[#allocation8 + $0xe8] sm:$0xff] }
  0x62   :  { %434 = vmatprep.subr.mxu0 %v171_v19  ;;  %521 = vmatprep.subr.mxu1 %v181_v20  ;;  %v746_v13 = vld [vmem:[#allocation8 + $0x70] sm:$0xff]  ;;  %v745_v16 = vld [vmem:[#allocation8 + $0x68] sm:$0xff]  ;;  %v792_v19 = vld [vmem:[#allocation8 + $0x1e0] sm:$0xff] }
  0x63   :  { %435 = vmatpush1.msra.mxu0 %v170_v21  ;;  %522 = vmatpush1.msra.mxu1 %v180_v22  ;;  %v778_v14 = vld [vmem:[#allocation8 + $0x170] sm:$0xff]  ;;  %v777_v17 = vld [vmem:[#allocation8 + $0x168] sm:$0xff]  ;;  %v744_v20 = vld [vmem:[#allocation8 + $0x60] sm:$0xff] }
  0x64   :  { %436 = vmatprep.subr.mxu0 %v163_v23  ;;  %523 = vmatprep.subr.mxu1 %v173_v24  ;;  %v776_v21 = vld [vmem:[#allocation8 + $0x160] sm:$0xff]  ;;  %v759_v22 = vld [vmem:[#allocation8 + $0xd8] sm:$0xff] }
  0x65   :  { %330 = vmatprep.mubr.f32.mxu0 %v1291_v0  ;;  %419 = vmatprep.mubr.f32.mxu1 %v1291_v0  ;;  %v791_v23 = vld [vmem:[#allocation8 + $0x1d8] sm:$0xff] }
  0x66   :  { %437 = vmatpush1.msra.mxu0 %v162_v25  ;;  %524 = vmatpush1.msra.mxu1 %v172_v26  ;;  %v743_v24 = vld [vmem:[#allocation8 + $0x58] sm:$0xff]  ;;  %v758_v26 = vld [vmem:[#allocation8 + $0xd0] sm:$0xff] }
  0x67   :  { %331 = vmatmul.mubr.f32.gmra.mxu0 %v1359_v27  ;;  %420 = vmatmul.mubr.f32.gmra.mxu1 %v1359_v27  ;;  %v775_v25 = vld [vmem:[#allocation8 + $0x158] sm:$0xff] }
  0x68   :  { %438 = vmatprep.subr.mxu0 %v155_v28  ;;  %525 = vmatprep.subr.mxu1 %v165_v29  ;;  %v742_v28 = vld [vmem:[#allocation8 + $0x50] sm:$0xff] }
  0x69   :  { %439 = vmatpush1.msra.mxu0 %v154_v30  ;;  %526 = vmatpush1.msra.mxu1 %v164_v31  ;;  %v774_v29 = vld [vmem:[#allocation8 + $0x150] sm:$0xff]  ;;  %v757_v30 = vld [vmem:[#allocation8 + $0xc8] sm:$0xff] }
  0x6a   :  { %440 = vmatprep.subr.mxu0 %v147_v32  ;;  %527 = vmatprep.subr.mxu1 %v157_v33  ;;  %v789_v31 = vld [vmem:[#allocation8 + $0x1c8] sm:$0xff] }
  0x6b   :  { %441 = vmatpush1.msra.mxu0 %v146_v34  ;;  %528 = vmatpush1.msra.mxu1 %v156_v35  ;;  %v741_v32 = vld [vmem:[#allocation8 + $0x48] sm:$0xff]  ;;  %v756_v34 = vld [vmem:[#allocation8 + $0xc0] sm:$0xff] }
  0x6c   :  { %442 = vmatprep.subr.mxu0 %v139_v36  ;;  %529 = vmatprep.subr.mxu1 %v149_v37  ;;  %v773_v33 = vld [vmem:[#allocation8 + $0x148] sm:$0xff]  ;;  %v788_v35 = vld [vmem:[#allocation8 + $0x1c0] sm:$0xff] }
  0x6d   :  { %443 = vmatpush1.msra.mxu0 %v138_v38  ;;  %530 = vmatpush1.msra.mxu1 %v148_v39  ;;  %v740_v36 = vld [vmem:[#allocation8 + $0x40] sm:$0xff]  ;;  %v755_v38 = vld [vmem:[#allocation8 + $0xb8] sm:$0xff] }
  0x6e   :  { %444 = vmatprep.subr.mxu0 %v131_v40  ;;  %531 = vmatprep.subr.mxu1 %v141_v41  ;;  %v772_v37 = vld [vmem:[#allocation8 + $0x140] sm:$0xff]  ;;  %v787_v39 = vld [vmem:[#allocation8 + $0x1b8] sm:$0xff] }
  0x6f   :  { %445 = vmatpush1.msra.mxu0 %v130_v42  ;;  %532 = vmatpush1.msra.mxu1 %v140_v43  ;;  %v739_v40 = vld [vmem:[#allocation8 + $0x38] sm:$0xff]  ;;  %v754_v42 = vld [vmem:[#allocation8 + $0xb0] sm:$0xff] }
  0x70   :  { %446 = vmatprep.subr.mxu0 %v123_v44  ;;  %533 = vmatprep.subr.mxu1 %v133_v45  ;;  %v771_v41 = vld [vmem:[#allocation8 + $0x138] sm:$0xff]  ;;  %v786_v43 = vld [vmem:[#allocation8 + $0x1b0] sm:$0xff] }
  0x71   :  { %447 = vmatpush1.msra.mxu0 %v122_v46  ;;  %534 = vmatpush1.msra.mxu1 %v132_v47  ;;  %v738_v44 = vld [vmem:[#allocation8 + $0x30] sm:$0xff]  ;;  %v753_v46 = vld [vmem:[#allocation8 + $0xa8] sm:$0xff] }
  0x72   :  { %448 = vmatprep.subr.mxu0 %v115_v48  ;;  %535 = vmatprep.subr.mxu1 %v125_v49  ;;  %v770_v45 = vld [vmem:[#allocation8 + $0x130] sm:$0xff]  ;;  %v785_v47 = vld [vmem:[#allocation8 + $0x1a8] sm:$0xff] }
  0x73   :  { %449 = vmatpush1.msra.mxu0 %v114_v50  ;;  %536 = vmatpush1.msra.mxu1 %v124_v51  ;;  %v737_v48 = vld [vmem:[#allocation8 + $0x28] sm:$0xff]  ;;  %v752_v50 = vld [vmem:[#allocation8 + $0xa0] sm:$0xff] }
  0x74   :  { %450 = vmatprep.subr.mxu0 %v107_v52  ;;  %537 = vmatprep.subr.mxu1 %v117_v53  ;;  %v769_v49 = vld [vmem:[#allocation8 + $0x128] sm:$0xff]  ;;  %v784_v51 = vld [vmem:[#allocation8 + $0x1a0] sm:$0xff] }
  0x75   :  { %451 = vmatpush1.msra.mxu0 %v106_v54  ;;  %538 = vmatpush1.msra.mxu1 %v116_v55  ;;  %v736_v52 = vld [vmem:[#allocation8 + $0x20] sm:$0xff]  ;;  %v751_v54 = vld [vmem:[#allocation8 + $0x98] sm:$0xff] }
  0x76   :  { %452 = vmatprep.subr.mxu0 %v99_v56  ;;  %539 = vmatprep.subr.mxu1 %v109_v57  ;;  %v768_v53 = vld [vmem:[#allocation8 + $0x120] sm:$0xff]  ;;  %v783_v55 = vld [vmem:[#allocation8 + $0x198] sm:$0xff] }
  0x77   :  { %453 = vmatpush1.msra.mxu0 %v98_v58  ;;  %540 = vmatpush1.msra.mxu1 %v108_v59  ;;  %v735_v56 = vld [vmem:[#allocation8 + $0x18] sm:$0xff]  ;;  %v750_v58 = vld [vmem:[#allocation8 + $0x90] sm:$0xff] }
  0x78   :  { %454 = vmatprep.subr.mxu0 %v91_v60  ;;  %541 = vmatprep.subr.mxu1 %v101_v61  ;;  %v767_v57 = vld [vmem:[#allocation8 + $0x118] sm:$0xff]  ;;  %v782_v59 = vld [vmem:[#allocation8 + $0x190] sm:$0xff] }
  0x79   :  { %455 = vmatpush1.msra.mxu0 %v90_v62  ;;  %542 = vmatpush1.msra.mxu1 %v100_v63  ;;  %v734_v60 = vld [vmem:[#allocation8 + $0x10] sm:$0xff]  ;;  %v749_v62 = vld [vmem:[#allocation8 + $0x88] sm:$0xff] }
  0x7a   :  { %456 = vmatprep.subr.mxu0 %v83_v1  ;;  %543 = vmatprep.subr.mxu1 %v93_v3  ;;  %v766_v61 = vld [vmem:[#allocation8 + $0x110] sm:$0xff]  ;;  %v781_v63 = vld [vmem:[#allocation8 + $0x188] sm:$0xff] }
  0x7b   :  { %457 = vmatpush1.msra.mxu0 %v82_v4  ;;  %490 = vmatprep.mubr.f32.mxu0 %v1291_v0  ;;  %v733_v1 = vld [vmem:[#allocation8 + $0x8] sm:$0xff]  ;;  %v748_v4 = vld [vmem:[#allocation8 + $0x80] sm:$0xff] }
  0x7c   :  { %544 = vmatpush1.msra.mxu1 %v92_v5  ;;  %491 = vmatmul.mubr.f32.vlgmr.msra.gmra.mxu0 %v1343_v2  ;;  %v765_v3 = vld [vmem:[#allocation8 + $0x108] sm:$0xff]  ;;  %v780_v5 = vld [vmem:[#allocation8 + $0x180] sm:$0xff] }
  0x7d   :  { %545 = vmatprep.subr.mxu1 %v85_v6  ;;  %579 = vmatprep.mubr.f32.mxu1 %v1291_v0  ;;  %v732_v6 = vld [vmem:[#allocation8] sm:$0xff] }
  0x7e   :  { %546 = vmatpush1.msra.mxu1 %v84_v7  ;;  %496 = vmatprep.mubr.f32.mxu0 %v1291_v0  ;;  %v764_v7 = vld [vmem:[#allocation8 + $0x100] sm:$0xff] }
  0x7f   :  { %580 = vmatmul.mubr.f32.vlgmr.msra.gmra.mxu1 %v1343_v2  ;;  %v763_v2 = vld [vmem:[#allocation8 + $0xf8] sm:$0xff]  ;;  %1057 = vmatprep.subr.mxu1 %v795_v8 }
  0x80   :  { %497 = vmatmul.mubr.f32.gmra.mxu0 %v1348_v9  ;;  %585 = vmatprep.mubr.f32.mxu1 %v1291_v0 }
  0x81   :  { %502 = vmatprep.mubr.f32.mxu0 %v1291_v0  ;;  %1013 = vmatprep.subr.mxu0 %v763_v2  ;;  %v208_v2 = vlaneseq }
  0x82   :  { %1014 = vmatpush3.msra.mxu0 %v747_v10 }
  0x83   :  { %586 = vmatmul.mubr.f32.gmra.mxu1 %v1348_v9  ;;  %v779_v9 = vld [vmem:[#allocation8 + $0x178] sm:$0xff]  ;;  %1015 = vmatprep.subr.mxu0 %v762_v11  ;;  %v1381_v8 = vshrl.u32 %v208_v2, 7 }
  0x84   :  { %503 = vmatmul.mubr.f32.gmra.mxu0 %v1353_v18  ;;  %591 = vmatprep.mubr.f32.mxu1 %v1291_v0  ;;  %v1385_v11 = vld [vmem:[#allocation7] sm:$0xff] }
  0x85   :  { %508 = vmatprep.mubr.f32.mxu0 %v1291_v0  ;;  %1058 = vmatpush3.msra.mxu1 %v779_v9  ;;  %v210_v10 = vsub.s32 0, %v1381_v8  ;;  %v218_v9 = vsub.s32 2, %v1381_v8 }
  0x86   :  { %1059 = vmatprep.subr.mxu1 %v794_v12  ;;  %1016 = vmatpush3.msra.mxu0 %v746_v13  ;;  %v214_v12 = vsub.s32 1, %v1381_v8  ;;  %v222_v13 = vsub.s32 3, %v1381_v8 }
  0x87   :  { %592 = vmatmul.mubr.f32.gmra.mxu1 %v1353_v18  ;;  %1017 = vmatprep.subr.mxu0 %v761_v15  ;;  %v760_v18 = vld [vmem:[#allocation8 + $0xe0] sm:$0xff]  ;;  %v1391_v15 = vrot.slane %v1385_v11, %v218_v9 }
  0x88   :  { %509 = vmatmul.mubr.f32.gmra.mxu0 %v1359_v27  ;;  %597 = vmatprep.mubr.f32.mxu1 %v1291_v0  ;;  %v793_v0 = vld [vmem:[#allocation8 + $0x1e8] sm:$0xff] }
  0x89   :  { %1060 = vmatpush3.msra.mxu1 %v778_v14  ;;  %1018 = vmatpush3.msra.mxu0 %v745_v16  ;;  %v211_v14 = vrot.slane %v1385_v11, %v210_v10  ;;  %v1397_v16 = vrot.slane %v1385_v11, %v222_v13 }
  0x8a   :  { %1061 = vmatprep.subr.mxu1 %v793_v0  ;;  %1019 = vmatprep.subr.mxu0 %v760_v18  ;;  %v1394_v0 = vrot.slane %v1385_v11, %v214_v12 }
  0x8b   :  { %598 = vmatmul.mubr.f32.gmra.mxu1 %v1359_v27  ;;  %1020 = vmatpush3.msra.mxu0 %v744_v20  ;;  %v790_v27 = vld [vmem:[#allocation8 + $0x1d0] sm:$0xff] }
  0x8c   :  { %1062 = vmatpush3.msra.mxu1 %v777_v17  ;;  %1021 = vmatprep.subr.mxu0 %v759_v22 }
  0x8d   :  { %1063 = vmatprep.subr.mxu1 %v792_v19  ;;  %1022 = vmatpush3.msra.mxu0 %v743_v24 }
  0x8e   :  { %1064 = vmatpush3.msra.mxu1 %v776_v21  ;;  %1023 = vmatprep.subr.mxu0 %v758_v26 }
  0x8f   :  { %1065 = vmatprep.subr.mxu1 %v791_v23  ;;  %1024 = vmatpush3.msra.mxu0 %v742_v28 }
  0x90   :  { %1066 = vmatpush3.msra.mxu1 %v775_v25  ;;  %1025 = vmatprep.subr.mxu0 %v757_v30 }
  0x91   :  { %1067 = vmatprep.subr.mxu1 %v790_v27  ;;  %1026 = vmatpush3.msra.mxu0 %v741_v32 }
  0x92   :  { %1068 = vmatpush3.msra.mxu1 %v774_v29  ;;  %1027 = vmatprep.subr.mxu0 %v756_v34 }
  0x93   :  { %1069 = vmatprep.subr.mxu1 %v789_v31  ;;  %1028 = vmatpush3.msra.mxu0 %v740_v36 }
  0x94   :  { %1070 = vmatpush3.msra.mxu1 %v773_v33  ;;  %1029 = vmatprep.subr.mxu0 %v755_v38 }
  0x95   :  { %1071 = vmatprep.subr.mxu1 %v788_v35  ;;  %1030 = vmatpush3.msra.mxu0 %v739_v40 }
  0x96   :  { %1072 = vmatpush3.msra.mxu1 %v772_v37  ;;  %1031 = vmatprep.subr.mxu0 %v754_v42 }
  0x97   :  { %1073 = vmatprep.subr.mxu1 %v787_v39  ;;  %1032 = vmatpush3.msra.mxu0 %v738_v44 }
  0x98   :  { %1074 = vmatpush3.msra.mxu1 %v771_v41  ;;  %1033 = vmatprep.subr.mxu0 %v753_v46 }
  0x99   :  { %1075 = vmatprep.subr.mxu1 %v786_v43  ;;  %1034 = vmatpush3.msra.mxu0 %v737_v48 }
  0x9a   :  { %1076 = vmatpush3.msra.mxu1 %v770_v45  ;;  %1035 = vmatprep.subr.mxu0 %v752_v50 }
  0x9b   :  { %1077 = vmatprep.subr.mxu1 %v785_v47  ;;  %1036 = vmatpush3.msra.mxu0 %v736_v52 }
  0x9c   :  { %1078 = vmatpush3.msra.mxu1 %v769_v49  ;;  %1037 = vmatprep.subr.mxu0 %v751_v54 }
  0x9d   :  { %1079 = vmatprep.subr.mxu1 %v784_v51  ;;  %1038 = vmatpush3.msra.mxu0 %v735_v56 }
  0x9e   :  { %1080 = vmatpush3.msra.mxu1 %v768_v53  ;;  %1039 = vmatprep.subr.mxu0 %v750_v58 }
  0x9f   :  { %1081 = vmatprep.subr.mxu1 %v783_v55  ;;  %1040 = vmatpush3.msra.mxu0 %v734_v60 }
  0xa0   :  { %1082 = vmatpush3.msra.mxu1 %v767_v57  ;;  %1041 = vmatprep.subr.mxu0 %v749_v62 }
  0xa1   :  { %1083 = vmatprep.subr.mxu1 %v782_v59  ;;  %1042 = vmatpush3.msra.mxu0 %v733_v1 }
  0xa2   :  { %1084 = vmatpush3.msra.mxu1 %v766_v61  ;;  %1043 = vmatprep.subr.mxu0 %v748_v4 }
  0xa3   :  { %1085 = vmatprep.subr.mxu1 %v781_v63  ;;  %1044 = vmatpush3.msra.mxu0 %v732_v6 }
  0xa4   :  { %1086 = vmatpush3.msra.mxu1 %v765_v3 }
  0xa5   :  { %1087 = vmatprep.subr.mxu1 %v780_v5 }
  0xa6   :  { %1088 = vmatpush3.msra.mxu1 %v764_v7 }
 0x116   :  { %v314_v17 = vpop.f32.mrf.mxu0  ;;  %v403_v18 = vpop.f32.mrf.mxu1 }
 0x117   :  { %v1399_v19 = vadd.f32 %v314_v17, %v211_v14  ;;  %v1402_v20 = vadd.f32 %v403_v18, %v1391_v15 }
 0x118   :  { %v316_v21 = vpop.f32.mrf.mxu0  ;;  %v405_v22 = vpop.f32.mrf.mxu1 }
 0x119   :  { %v996_v23 = vmul.f32 -1.442695, %v1399_v19  ;;  %v998_v24 = vmul.f32 -1.442695, %v1402_v20  ;;  %v1407_v25 = vadd.f32 %v316_v21, %v1394_v0  ;;  %v1410_v26 = vadd.f32 %v405_v22, %v1397_v16 }
 0x11b   :  { %1111 = vpow2.f32 %v996_v23  ;;  %v997_v27 = vmul.f32 -1.442695, %v1407_v25  ;;  %v999_v28 = vmul.f32 -1.442695, %v1410_v26  ;;  %v320_v29 = vpop.f32.mrf.mxu0  ;;  %v409_v30 = vpop.f32.mrf.mxu1 }
 0x11c   :  { %1113 = vpow2.f32 %v998_v24  ;;  %v1414_v31 = vadd.f32 %v320_v29, %v211_v14  ;;  %v1417_v32 = vadd.f32 %v409_v30, %v1391_v15 }
 0x11d   :  { %1115 = vpow2.f32 %v997_v27  ;;  %v322_v33 = vpop.f32.mrf.mxu0  ;;  %v411_v34 = vpop.f32.mrf.mxu1 }
 0x11e   :  { %1117 = vpow2.f32 %v999_v28  ;;  %v1000_v35 = vmul.f32 -1.442695, %v1414_v31  ;;  %v1002_v36 = vmul.f32 -1.442695, %v1417_v32  ;;  %v1422_v37 = vadd.f32 %v322_v33, %v1394_v0 }
 0x11f   :  { %v1425_v38 = vadd.f32 %v411_v34, %v1397_v16  ;;  %v226_v33 = vsub.s32 4, %v1381_v8 }
 0x120   :  { %1119 = vpow2.f32 %v1000_v35  ;;  %v1001_v39 = vmul.f32 -1.442695, %v1422_v37 }
 0x121   :  { %1121 = vpow2.f32 %v1002_v36  ;;  %v1003_v40 = vmul.f32 -1.442695, %v1425_v38  ;;  %v326_v41 = vpop.f32.mrf.mxu0  ;;  %v415_v42 = vpop.f32.mrf.mxu1  ;;  %v234_v36 = vsub.s32 6, %v1381_v8 }
 0x122   :  { %1123 = vpow2.f32 %v1001_v39  ;;  %v1429_v43 = vadd.f32 %v326_v41, %v211_v14  ;;  %v1432_v44 = vadd.f32 %v415_v42, %v1391_v15  ;;  %v1463_v41 = vrot.slane %v1385_v11, %v226_v33 }
 0x123   :  { %1125 = vpow2.f32 %v1003_v40  ;;  %v328_v45 = vpop.f32.mrf.mxu0  ;;  %v417_v46 = vpop.f32.mrf.mxu1  ;;  %v238_v42 = vsub.s32 7, %v1381_v8 }
 0x124   :  { %v1004_v47 = vmul.f32 -1.442695, %v1429_v43  ;;  %v1006_v48 = vmul.f32 -1.442695, %v1432_v44  ;;  %v1437_v49 = vadd.f32 %v328_v45, %v1394_v0  ;;  %v1440_v50 = vadd.f32 %v417_v46, %v1397_v16 }
 0x126   :  { %1127 = vpow2.f32 %v1004_v47  ;;  %v1005_v51 = vmul.f32 -1.442695, %v1437_v49  ;;  %v1007_v52 = vmul.f32 -1.442695, %v1440_v50 }
 0x127   :  { %1129 = vpow2.f32 %v1006_v48  ;;  %v332_v53 = vpop.f32.mrf.mxu0  ;;  %v421_v58 = vpop.f32.mrf.mxu1 }
 0x128   :  { %v1112_v54 = vpop.eup %1111  ;;  %1131 = vpow2.f32 %v1005_v51  ;;  %v1444_v55 = vadd.f32 %v332_v53, %v211_v14  ;;  %v1448_v4 = vadd.f32 %v421_v58, %v1391_v15  ;;  %v1470_v51 = vrot.slane %v1385_v11, %v234_v36 }
 0x129   :  { %v1114_v56 = vpop.eup %1113  ;;  %v652_v57 = vadd.f32 1.0, %v1112_v54  ;;  %1133 = vpow2.f32 %v1007_v52  ;;  %v334_v61 = vpop.f32.mrf.mxu0 }
 0x12a   :  { %v1116_v59 = vpop.eup %1115  ;;  %v654_v60 = vadd.f32 1.0, %v1114_v56  ;;  %v1008_v1 = vmul.f32 -1.442695, %v1444_v55  ;;  %v1451_v6 = vadd.f32 %v334_v61, %v1394_v0  ;;  %v423_v12 = vpop.f32.mrf.mxu1  ;;  %v1010_v17 = vmul.f32 -1.442695, %v1448_v4 }
 0x12b   :  { %v1118_v62 = vpop.eup %1117  ;;  %1135 = vrcp.f32 %v652_v57  ;;  %v653_v63 = vadd.f32 1.0, %v1116_v59  ;;  %v1456_v0 = vadd.f32 %v423_v12, %v1397_v16  ;;  %v230_v16 = vsub.s32 5, %v1381_v8 }
 0x12c   :  { %1137 = vrcp.f32 %v654_v60  ;;  %v655_v3 = vadd.f32 1.0, %v1118_v62  ;;  %v1009_v18 = vmul.f32 -1.442695, %v1451_v6  ;;  %v1476_v8 = vrot.slane %v1385_v11, %v238_v42 }
 0x12d   :  { %v1120_v5 = vpop.eup %1119  ;;  %1139 = vrcp.f32 %v653_v63  ;;  %v1011_v30 = vmul.f32 -1.442695, %v1456_v0  ;;  %v1467_v46 = vrot.slane %v1385_v11, %v230_v16 }
 0x12e   :  { %v1122_v7 = vpop.eup %1121  ;;  %1141 = vrcp.f32 %v655_v3  ;;  %v656_v2 = vadd.f32 1.0, %v1120_v5 }
 0x12f   :  { %v1124_v10 = vpop.eup %1123  ;;  %v658_v9 = vadd.f32 1.0, %v1122_v7  ;;  %1143 = vpow2.f32 %v1008_v1 }
 0x130   :  { %v1126_v13 = vpop.eup %1125  ;;  %1145 = vrcp.f32 %v656_v2  ;;  %v657_v14 = vadd.f32 1.0, %v1124_v10 }
 0x131   :  { %1147 = vrcp.f32 %v658_v9  ;;  %v659_v15 = vadd.f32 1.0, %v1126_v13 }
 0x132   :  { %1149 = vrcp.f32 %v657_v14 }
 0x133   :  { %v1128_v21 = vpop.eup %1127  ;;  %1151 = vrcp.f32 %v659_v15 }
 0x134   :  { %v1130_v22 = vpop.eup %1129  ;;  %v660_v23 = vadd.f32 1.0, %v1128_v21  ;;  %1153 = vpow2.f32 %v1010_v17 }
 0x135   :  { %v1132_v24 = vpop.eup %1131  ;;  %v662_v27 = vadd.f32 1.0, %v1130_v22  ;;  %1155 = vpow2.f32 %v1009_v18 }
 0x136   :  { %v1134_v28 = vpop.eup %1133  ;;  %1157 = vrcp.f32 %v660_v23  ;;  %v661_v29 = vadd.f32 1.0, %v1132_v24 }
 0x137   :  { %1159 = vrcp.f32 %v662_v27  ;;  %v663_v34 = vadd.f32 1.0, %v1134_v28 }
 0x138   :  { %v1136_v35 = vpop.eup %1135  ;;  %1161 = vrcp.f32 %v661_v29 }
 0x139   :  { %v1138_v39 = vpop.eup %1137  ;;  %1163 = vrcp.f32 %v663_v34  ;;  %v700_v56 = vmul.f32 %v1136_v35, %v1399_v19 }
 0x13a   :  { %v1140_v40 = vpop.eup %1139  ;;  %1165 = vpow2.f32 %v1011_v30  ;;  %v702_v1 = vmul.f32 %v1138_v39, %v1402_v20 }
 0x13b   :  { %v1142_v45 = vpop.eup %1141  ;;  %v701_v53 = vmul.f32 %v1140_v40, %v1407_v25 }
 0x13c   :  { %v1144_v47 = vpop.eup %1143  ;;  %v492_v48 = vpop.f32.mrf.mxu0  ;;  %v703_v3 = vmul.f32 %v1142_v45, %v1410_v26 }
 0x13d   :  { %v1146_v52 = vpop.eup %1145  ;;  %v664_v57 = vadd.f32 1.0, %v1144_v47  ;;  %v493_v58 = vadd.f32 %v492_v48, %v1463_v41 }
 0x13e   :  { %v1148_v54 = vpop.eup %1147  ;;  %v494_v59 = vpop.f32.mrf.mxu0  ;;  %v704_v7 = vmul.f32 %v1146_v52, %v1414_v31 }
 0x13f   :  { %v1150_v60 = vpop.eup %1149  ;;  %v495_v61 = vadd.f32 %v494_v59, %v1467_v46  ;;  %v581_v62 = vpop.f32.mrf.mxu1  ;;  %1167 = vrcp.f32 %v664_v57  ;;  %v716_v13 = vmul.f32 %v700_v56, %v493_v58 }
 0x140   :  { %v1152_v63 = vpop.eup %1151  ;;  %v582_v25 = vadd.f32 %v581_v62, %v1470_v51  ;;  %v498_v5 = vpop.f32.mrf.mxu0  ;;  %v705_v2 = vmul.f32 %v1150_v60, %v1422_v37  ;;  %v706_v37 = vmul.f32 %v1148_v54, %v1417_v32 }
 0x141   :  { %v1154_v19 = vpop.eup %1153  ;;  %v717_v10 = vmul.f32 %v701_v53, %v495_v61  ;;  %v499_v11 = vadd.f32 %v498_v5, %v1463_v41  ;;  %v583_v9 = vpop.f32.mrf.mxu1  ;;  %v707_v22 = vmul.f32 %v1152_v63, %v1425_v38 }
 0x142   :  { %v1156_v12 = vpop.eup %1155  ;;  %v584_v14 = vadd.f32 %v583_v9, %v1476_v8  ;;  %v500_v20 = vpop.f32.mrf.mxu0  ;;  %v666_v26 = vadd.f32 1.0, %v1154_v19  ;;  %v718_v23 = vmul.f32 %v702_v1, %v582_v25 }
 0x143   :  { %v1158_v17 = vpop.eup %1157  ;;  %v665_v15 = vadd.f32 1.0, %v1156_v12  ;;  %v501_v18 = vadd.f32 %v500_v20, %v1467_v46  ;;  %v587_v21 = vpop.f32.mrf.mxu1  ;;  %867 = vmatprep.mubr.f32.mxu0 %v717_v10  ;;  %v720_v29 = vmul.f32 %v704_v7, %v499_v11 }
 0x144   :  { %v1160_v31 = vpop.eup %1159  ;;  %v719_v24 = vmul.f32 %v703_v3, %v584_v14  ;;  %v504_v27 = vpop.f32.mrf.mxu0  ;;  %868 = vmatmul.mubr.f32.vlgmr.msra.gmra.mxu0 %v716_v13  ;;  %v588_v33 = vadd.f32 %v587_v21, %v1470_v51  ;;  %v708_v35 = vmul.f32 %v1158_v17, %v1429_v43 }
 0x145   :  { %v1162_v28 = vpop.eup %1161  ;;  %1169 = vrcp.f32 %v665_v15  ;;  %v721_v30 = vmul.f32 %v705_v2, %v501_v18  ;;  %v589_v34 = vpop.f32.mrf.mxu1  ;;  %v505_v32 = vadd.f32 %v504_v27, %v1463_v41  ;;  %v710_v43 = vmul.f32 %v1160_v31, %v1432_v44 }
 0x146   :  { %v1164_v16 = vpop.eup %1163  ;;  %v709_v36 = vmul.f32 %v1162_v28, %v1437_v49  ;;  %v590_v38 = vadd.f32 %v589_v34, %v1476_v8  ;;  %952 = vmatprep.mubr.f32.mxu1 %v719_v24  ;;  %v506_v39 = vpop.f32.mrf.mxu0  ;;  %1171 = vrcp.f32 %v666_v26  ;;  %v722_v49 = vmul.f32 %v706_v37, %v588_v33 }
 0x147   :  { %v1166_v40 = vpop.eup %1165  ;;  %v507_v42 = vadd.f32 %v506_v39, %v1467_v46  ;;  %v593_v45 = vpop.f32.mrf.mxu1  ;;  %953 = vmatmul.mubr.f32.vlgmr.msra.gmra.mxu1 %v718_v23  ;;  %872 = vmatprep.mubr.f32.mxu0 %v721_v30  ;;  %v711_v47 = vmul.f32 %v1164_v16, %v1440_v50  ;;  %v724_v57 = vmul.f32 %v708_v35, %v505_v32 }
 0x148   :  { %v667_v48 = vadd.f32 1.0, %v1166_v40  ;;  %v723_v52 = vmul.f32 %v707_v22, %v590_v38  ;;  %873 = vmatmul.mubr.f32.gmra.mxu0 %v720_v29  ;;  %v594_v54 = vadd.f32 %v593_v45, %v1470_v51  ;;  %v510_v59 = vpop.f32.mrf.mxu0 }
 0x149   :  { %v725_v53 = vmul.f32 %v709_v36, %v507_v42  ;;  %v595_v56 = vpop.f32.mrf.mxu1  ;;  %v511_v3 = vadd.f32 %v510_v59, %v1463_v41 }
 0x14a   :  { %1173 = vrcp.f32 %v667_v48  ;;  %v596_v58 = vadd.f32 %v595_v56, %v1476_v8  ;;  %957 = vmatprep.mubr.f32.mxu1 %v723_v52  ;;  %v726_v50 = vmul.f32 %v710_v43, %v594_v54  ;;  %v512_v44 = vpop.f32.mrf.mxu0 }
 0x14b   :  { %958 = vmatmul.mubr.f32.gmra.mxu1 %v722_v49  ;;  %877 = vmatprep.mubr.f32.mxu0 %v725_v53  ;;  %v599_v62 = vpop.f32.mrf.mxu1  ;;  %v513_v5 = vadd.f32 %v512_v44, %v1467_v46  ;;  %v1012_v46 = vld [vmem:[%s1520_s4] ss:$0 sm:$0xff]  ;;  %s1292_s4 = smov [#allocation10]  }
 0x14c   :  { %v727_v60 = vmul.f32 %v711_v47, %v596_v58  ;;  %878 = vmatmul.mubr.f32.gmra.mxu0 %v724_v57  ;;  %v1168_v61 = vpop.eup %1167  ;;  %v600_v13 = vadd.f32 %v599_v62, %v1470_v51  ;;  %s982_s15 = sshll.u32 %s1292_s4, 4  ;;  %s983_s15 = int_to_ptr.vmem [resolvable:$true] %s982_s15 }
 0x14d   :  { %v712_v1 = vmul.f32 %v1168_v61, %v1444_v55  ;;  %v601_v19 = vpop.f32.mrf.mxu1  ;;  %s1255_s16 = scalar_lea.vmem %s983_s15, 512  ;;  %p1260_p7 = scmp.lt.s32.totalorder %s983_s15, %s983_s15 }
 0x14e   :  { %962 = vmatprep.mubr.f32.mxu1 %v727_v60  ;;  %v602_v11 = vadd.f32 %v601_v19, %v1476_v8  ;;  %p1256_p6 = scmp.ne.s32.totalorder %s983_s15, %s1255_s16  ;;  %p1261_p8 = scmp.lt.s32.totalorder %s1255_s16, %s1255_s16 }
 0x14f   :  { %963 = vmatmul.mubr.f32.gmra.mxu1 %v726_v50  ;;  %v728_v10 = vmul.f32 %v712_v1, %v511_v3 }
 0x150   :  { %p1262_p9 = por %p1261_p8, %p1260_p7 }
 0x152   :  { %v1170_v63 = vpop.eup %1169  ;;  %p1263_p10 = pnand %p1262_p9, %p1256_p6 }
 0x153   :  { %v713_v25 = vmul.f32 %v1170_v63, %v1451_v6  ;;  %v1172_v7 = vpop.eup %1171 }
 0x154   :  { %v714_v12 = vmul.f32 %v1172_v7, %v1448_v4 }
 0x155   :  { %v729_v2 = vmul.f32 %v713_v25, %v513_v5 }
 0x156   :  { %v730_v14 = vmul.f32 %v714_v12, %v600_v13 }
 0x157   :  { %v1174_v9 = vpop.eup %1173  ;;  %882 = vmatprep.mubr.f32.mxu0 %v729_v2 }
 0x158   :  { %v715_v55 = vmul.f32 %v1174_v9, %v1456_v0  ;;  %883 = vmatmul.mubr.f32.gmra.mxu0 %v728_v10 }
 0x15a   :  { %v731_v41 = vmul.f32 %v715_v55, %v602_v11 }
 0x15c   :  { %967 = vmatprep.mubr.f32.mxu1 %v731_v41 }
 0x15d   :  { %968 = vmatmul.mubr.f32.gmra.mxu1 %v730_v14 }
 0x204   :  { %v1045_v6 = vpop.f32.mrf.mxu0 }
 0x206   :  { %v1046_v20 = vpop.f32.mrf.mxu0 }
 0x207   :  { %v1089_v8 = vpop.f32.mrf.mxu1  ;;  %v1047_v17 = vadd.f32 %v1046_v20, %v1045_v6 }
 0x208   :  { %v1048_v26 = vpop.f32.mrf.mxu0 }
 0x209   :  { %v870_v4 = vadd.f32 %v1047_v17, %v1012_v46  ;;  %v1090_v15 = vpop.f32.mrf.mxu1 }
 0x20a   :  { %v1091_v51 = vadd.f32 %v1090_v15, %v1089_v8  ;;  %v1049_v18 = vpop.f32.mrf.mxu0 }
 0x20b   :  { %v1092_v21 = vpop.f32.mrf.mxu1  ;;  %v1050_v0 = vadd.f32 %v1049_v18, %v1048_v26 }
 0x20c   :  { %v955_v31 = vadd.f32 %v1091_v51, %v870_v4  ;;  %v1051_v37 = vpop.f32.mrf.mxu0 }
 0x20d   :  { %v875_v22 = vadd.f32 %v1050_v0, %v1012_v46  ;;  %v1093_v23 = vpop.f32.mrf.mxu1 }
 0x20e   :  { %973 = vst [vmem:[#allocation10] sm:$0xff] %v955_v31  ;;  %v1094_v24 = vadd.f32 %v1093_v23, %v1092_v21  ;;  %v1052_v27 = vpop.f32.mrf.mxu0 }
 0x20f   :  { %v1095_v28 = vpop.f32.mrf.mxu1  ;;  %v1053_v29 = vadd.f32 %v1052_v27, %v1051_v37 }
 0x210   :  { %v960_v30 = vadd.f32 %v1094_v24, %v875_v22 }
 0x211   :  { %v880_v33 = vadd.f32 %v1053_v29, %v1012_v46  ;;  %v1096_v34 = vpop.f32.mrf.mxu1 }
 0x212   :  { %974 = vst [vmem:[#allocation10 + $0x8] sm:$0xff] %v960_v30  ;;  %v1097_v16 = vadd.f32 %v1096_v34, %v1095_v28 }
 0x214   :  { %v965_v35 = vadd.f32 %v1097_v16, %v880_v33 }
 0x216   :  { %975 = vst [vmem:[#allocation10 + $0x10] sm:$0xff] %v965_v35 }
 0x218   :  { %v1054_v36 = vpop.f32.mrf.mxu0 }
 0x21a   :  { %v1055_v32 = vpop.f32.mrf.mxu0 }
 0x21b   :  { %v1056_v38 = vadd.f32 %v1055_v32, %v1054_v36 }
 0x21d   :  { %v1098_v39 = vpop.f32.mrf.mxu1  ;;  %v885_v40 = vadd.f32 %v1056_v38, %v1012_v46 }
 0x21f   :  { %v1099_v42 = vpop.f32.mrf.mxu1 }
 0x220   :  { %v1100_v45 = vadd.f32 %v1099_v42, %v1098_v39 }
 0x222   :  { %v970_v47 = vadd.f32 %v1100_v45, %v885_v40 }
 0x224   :  { %976 = vst [vmem:[#allocation10 + $0x18] sm:$0xff] %v970_v47 }
 0x225   :  { %1266 = shalt.err (!%p1263_p10)
}
 0x226   :  { %988 = dma.vmem_to_hbm [thread:$0]  %s983_s15, 512, %s1521_s5, [#allocation4], %s1287_s28, %s1287_s28, %s1288_s29  }
 0x227   :  { %1281 = dma.done.wait [#allocation4], 512  }
 0x228   :  { %1282 = vsyncadd [#allocation4], 4294966784 }
 0x229   :  { %992 = vsyncpa [#allocation3], 1 }
 0x22a   :  { %993 = vsyncpa [#allocation6], 1 }
 0x22b   :  { %994 = vsyncpa [#allocation9], 1 }
 0x22c   :  { %995 = vsyncpa [#allocation4], 1 }

</bundles_post_ra>
